<compile_context>
chip_gen: v6e
topology: v6e:2x2x1
jax: 0.10.0
libtpu: 0.0.40
codegen_flags: <defaults>
</compile_context>

<pallas_src>
import math
import numpy as np
import jax
import jax.numpy as jnp
from jax.experimental import pallas as pl
from jax.experimental.pallas import tpu as pltpu


def encoder_kernel(xcat_ref, wih_ref, bfold_ref, whh_ref, bhn_ref,
                   fcw_ref, fcb_ref, out_ref, hid_ref):
    S, B, H2 = out_ref.shape        # H2 = 2*H : fwd | bwd hidden, lane-concatenated
    H = H2 // 2
    H4 = 2 * H2                     # r|z block of the fused gate layout
    H6 = 3 * H2                     # full fused gate width (6H)

    # ---- hoisted, direction-fused input projection: ONE MXU pass for all steps
    # and BOTH directions.  b_fold already contains b_ih (all gates) plus the r/z
    # part of b_hh, so only the n-gate hidden bias remains inside the recurrence.
    gi = (jnp.dot(xcat_ref[...], wih_ref[...], preferred_element_type=jnp.float32)
          + bfold_ref[...])                                        # [S*B, 6H]

    whh = whh_ref[...]                                             # [2H, 6H] block-diagonal
    b_hn = jnp.broadcast_to(bhn_ref[...], (B, H2))                 # hoisted (no CSE of broadcasts)

    # ---- fused bidirectional recurrence: step t advances fwd time t AND bwd time
    # S-1-t with a single [B,2H] x [2H,6H] matmul per step (half the serial chain
    # of two separate direction loops).  Gate layout [r_f r_b z_f z_b n_f n_b]
    # keeps r, z and n lane-contiguous (vreg-aligned once H % 128 == 0).
    h = jnp.zeros((B, H2), jnp.float32)
    hs = []
    for t in range(S):                                  # S is small & static -> unrolled
        gi_t = gi[t * B:(t + 1) * B, :]                 # h-independent, off the chain
        gh = jnp.dot(h, whh, preferred_element_type=jnp.float32)     # [B, 6H]
        rz = jax.nn.sigmoid(gi_t[:, 0:H4] + gh[:, 0:H4])             # ONE EUP call for r and z
        r = rz[:, 0:H2]
        z = rz[:, H2:H4]
        n = jnp.tanh(gi_t[:, H4:H6] + r * (gh[:, H4:H6] + b_hn))
        h = (1.0 - z) * n + z * h
        hs.append(h)

    # ---- bulk output stores (one per direction), off the serial chain ----
    # hs[t][:, :H]   = fwd output at time t
    # hs[t][:, H:2H] = bwd output at time S-1-t  -> reverse the list for time order
    out_ref[:, :, 0:H] = jnp.stack([hc[:, 0:H] for hc in hs], axis=0)            # [S, B, H]
    out_ref[:, :, H:H2] = jnp.stack([hc[:, H:H2] for hc in reversed(hs)], axis=0)

    # ---- hidden = tanh(fc(cat(h_fwd_final, h_bwd_final))) ----
    # after the fused loop h IS exactly that concatenation (no in-kernel concat).
    hid_ref[...] = jnp.tanh(
        jnp.dot(h, fcw_ref[...], preferred_element_type=jnp.float32) + fcb_ref[...])


def encoder_forward_pallas(x_cat, w_ih_fused, b_fold, w_hh_fused, b_hn,
                           fc_w_t, fc_bias, *, seq, batch):
    SB, E2 = x_cat.shape
    S, B = seq, batch
    H6 = w_ih_fused.shape[1]
    H = H6 // 6
    D = fc_w_t.shape[1]

    args = (x_cat, w_ih_fused, b_fold, w_hh_fused, b_hn, fc_w_t, fc_bias)

    # Advisory cost estimate (helps XLA schedule the custom call).
    flops = (2 * SB * E2 * H6            # fused input projection
             + 2 * S * B * 2 * H * H6    # fused recurrent matmuls
             + 2 * B * 2 * H * D         # final fc
             + 12 * SB * H6)             # gate elementwise (rough)
    transcendentals = SB * H6 + B * D
    bytes_accessed = 4 * (sum(int(np.prod(a.shape)) for a in args)
                          + S * B * 2 * H + B * D)

    vmem = pl.BlockSpec(memory_space=pltpu.MemorySpace.VMEM)
    return pl.pallas_call(
        encoder_kernel,
        out_shape=(jax.ShapeDtypeStruct((S, B, 2 * H), jnp.float32),   # outputs (seq-major)
                   jax.ShapeDtypeStruct((B, D), jnp.float32)),         # hidden
        in_specs=[vmem] * len(args),
        out_specs=(vmem, vmem),
        cost_estimate=pl.CostEstimate(flops=flops,
                                      transcendentals=transcendentals,
                                      bytes_accessed=bytes_accessed),
    )(*args)


def build_fused_params(w_ih_f, b_ih_f, w_hh_f, b_hh_f,
                       w_ih_b, b_ih_b, w_hh_b, b_hh_b):
    """Pre-split / block-diagonal weight assembly for the direction-fused kernel."""
    H3, E = w_ih_f.shape
    H = H3 // 3
    # fused gate column layout: [ r_f | r_b | z_f | z_b | n_f | n_b ], each H wide
    fwd_slots = (0 * H, 2 * H, 4 * H)
    bwd_slots = (1 * H, 3 * H, 5 * H)

    def place(dst, w_t, row0, slots):
        for g, c0 in enumerate(slots):
            dst = dst.at[row0:row0 + w_t.shape[0], c0:c0 + H].set(
                w_t[:, g * H:(g + 1) * H])
        return dst

    w_ih_fused = jnp.zeros((2 * E, 6 * H), jnp.float32)
    w_ih_fused = place(w_ih_fused, w_ih_f.T, 0, fwd_slots)
    w_ih_fused = place(w_ih_fused, w_ih_b.T, E, bwd_slots)

    w_hh_fused = jnp.zeros((2 * H, 6 * H), jnp.float32)      # block-diagonal
    w_hh_fused = place(w_hh_fused, w_hh_f.T, 0, fwd_slots)
    w_hh_fused = place(w_hh_fused, w_hh_b.T, H, bwd_slots)

    b_fold = jnp.concatenate([
        b_ih_f[0:H] + b_hh_f[0:H],             # r_f
        b_ih_b[0:H] + b_hh_b[0:H],             # r_b
        b_ih_f[H:2 * H] + b_hh_f[H:2 * H],     # z_f
        b_ih_b[H:2 * H] + b_hh_b[H:2 * H],     # z_b
        b_ih_f[2 * H:3 * H],                   # n_f (b_hn stays in-loop: it is scaled by r)
        b_ih_b[2 * H:3 * H],                   # n_b
    ])[None, :]
    b_hn = jnp.concatenate([b_hh_f[2 * H:3 * H], b_hh_b[2 * H:3 * H]])[None, :]
    return w_ih_fused, b_fold, w_hh_fused, b_hn


def build_pe_table(max_len, d_model):
    pe = np.zeros((max_len, d_model), dtype=np.float32)
    for pos in range(max_len):
        for i in range(0, d_model, 2):
            pe[pos, i] = math.sin(pos / 10000 ** (2 * i / d_model))
            pe[pos, i + 1] = math.cos(pos / 10000 ** (2 * (i + 1) / d_model))
    return jnp.asarray(pe)


if __name__ == "__main__":
    # small shapes consistent with the module
    S, B = 8, 2                                   # src_len, batch
    INPUT_DIM, EMB, ENC_HID, DEC_HID = 64, 32, 16, 32
    MAX_LEN = 16

    key = jax.random.PRNGKey(0)
    ks = jax.random.split(key, 13)
    u = lambda k, shp: jax.random.uniform(k, shp, jnp.float32, -0.1, 0.1)

    # --- deterministic parameter init (shapes from __init__) ---
    emb_table = u(ks[0], (INPUT_DIM, EMB))                 # Embedder
    w_ih_f = u(ks[1], (3 * ENC_HID, EMB))                  # GRU weight_ih_l0 (r,z,n stacked)
    w_hh_f = u(ks[2], (3 * ENC_HID, ENC_HID))              # GRU weight_hh_l0
    b_ih_f = u(ks[3], (3 * ENC_HID,))
    b_hh_f = u(ks[4], (3 * ENC_HID,))
    w_ih_b = u(ks[5], (3 * ENC_HID, EMB))                  # *_reverse (backward direction)
    w_hh_b = u(ks[6], (3 * ENC_HID, ENC_HID))
    b_ih_b = u(ks[7], (3 * ENC_HID,))
    b_hh_b = u(ks[8], (3 * ENC_HID,))
    fc_W = u(ks[9], (DEC_HID, 2 * ENC_HID))                # fc: Linear(2*enc_hid -> dec_hid)
    fc_b = u(ks[10], (DEC_HID,))

    pe_full = build_pe_table(MAX_LEN, EMB)

    # --- example input (what Encoder.forward receives): seq-major token ids ---
    src = jax.random.randint(ks[11], (S, B), 0, INPUT_DIM)   # [src_len, batch]

    # --- wrapper glue (per review: fold scale+PE here, shrink the arg list) ---
    # TODO(synk): the embedding-row gather stays in the XLA wrapper; an in-kernel
    # DMA gather is not worthwhile at these sizes.
    x = emb_table[src] * math.sqrt(EMB) + pe_full[None, :B, :]   # [S,B,E]; PE-by-batch quirk
    # x_cat row block t = [ x[t] | x[S-1-t] ]: feeds fwd step t and bwd step t in
    # the fused recurrence from a single contiguous slice.
    x_cat = jnp.concatenate([x, x[::-1]], axis=-1).reshape(S * B, 2 * EMB)

    w_ih_fused, b_fold, w_hh_fused, b_hn = build_fused_params(
        w_ih_f, b_ih_f, w_hh_f, b_hh_f, w_ih_b, b_ih_b, w_hh_b, b_hh_b)

    outputs, hidden = encoder_forward_pallas(
        x_cat, w_ih_fused, b_fold, w_hh_fused, b_hn,
        fc_W.T, fc_b[None, :], seq=S, batch=B)
    jax.block_until_ready((outputs, hidden))

    # --- pure-JAX reference (mirrors the PyTorch forward) ---
    def reference():
        H = ENC_HID
        xr = emb_table[src] * math.sqrt(EMB) + pe_full[None, :B, :]   # [S,B,E]

        def cell(x_t, h, w_ih, w_hh, b_i, b_h):
            gi = x_t @ w_ih.T + b_i
            gh = h @ w_hh.T + b_h
            r = jax.nn.sigmoid(gi[:, :H] + gh[:, :H])
            z = jax.nn.sigmoid(gi[:, H:2 * H] + gh[:, H:2 * H])
            n = jnp.tanh(gi[:, 2 * H:] + r * gh[:, 2 * H:])
            return (1.0 - z) * n + z * h

        h = jnp.zeros((B, H), jnp.float32)
        outs_f = []
        for s in range(S):
            h = cell(xr[s], h, w_ih_f, w_hh_f, b_ih_f, b_hh_f)
            outs_f.append(h)
        h_f = h

        h = jnp.zeros((B, H), jnp.float32)
        outs_b = [None] * S
        for s in range(S - 1, -1, -1):
            h = cell(xr[s], h, w_ih_b, w_hh_b, b_ih_b, b_hh_b)
            outs_b[s] = h
        h_b = h

        outs = jnp.concatenate([jnp.stack(outs_f), jnp.stack(outs_b)], axis=-1)  # [S,B,2H]
        hid = jnp.tanh(jnp.concatenate([h_f, h_b], axis=1) @ fc_W.T + fc_b)      # [B,dec_hid]
        return outs, hid

    outs_ref, hid_ref_val = reference()
    assert np.allclose(np.asarray(outputs), np.asarray(outs_ref), rtol=2e-3, atol=2e-3)
    assert np.allclose(np.asarray(hidden), np.asarray(hid_ref_val), rtol=2e-3, atol=2e-3)
    assert outputs.shape == (S, B, 2 * ENC_HID) and hidden.shape == (B, DEC_HID)

    print("KERNEL_OK")
</pallas_src>

<mosaic_0001>
module attributes {stable_mosaic.version = 11 : i64} {
  func.func @encoder_kernel(%arg0: memref<16x64xf32, #tpu.memory_space<vmem>>, %arg1: memref<64x96xf32, #tpu.memory_space<vmem>>, %arg2: memref<1x96xf32, #tpu.memory_space<vmem>>, %arg3: memref<32x96xf32, #tpu.memory_space<vmem>>, %arg4: memref<1x32xf32, #tpu.memory_space<vmem>>, %arg5: memref<32x32xf32, #tpu.memory_space<vmem>>, %arg6: memref<1x32xf32, #tpu.memory_space<vmem>>, %arg7: memref<8x2x32xf32, #tpu.memory_space<vmem>>, %arg8: memref<2x32xf32, #tpu.memory_space<vmem>>) attributes {dimension_semantics = [], scalar_prefetch = 0 : i64, scratch_operands = 0 : i64, tpu.core_type = #tpu.core_type<tc>} {
    %c0 = arith.constant 0 : index
    %c0_0 = arith.constant 0 : index
    %0 = vector.load %arg0[%c0, %c0_0] : memref<16x64xf32, #tpu.memory_space<vmem>>, vector<16x64xf32>
    %c0_1 = arith.constant 0 : index
    %c0_2 = arith.constant 0 : index
    %1 = vector.load %arg1[%c0_1, %c0_2] : memref<64x96xf32, #tpu.memory_space<vmem>>, vector<64x96xf32>
    %cst = arith.constant dense<0.000000e+00> : vector<16x96xf32>
    %2 = tpu.matmul %0, %1, %cst {dimension_numbers = #tpu.dot_dimension_numbers<[1], [0], [0], [1], [0, 0, 1, 1], [], []>} : vector<16x64xf32>, vector<64x96xf32>, vector<16x96xf32> -> vector<16x96xf32>
    %c0_3 = arith.constant 0 : index
    %c0_4 = arith.constant 0 : index
    %3 = vector.load %arg2[%c0_3, %c0_4] : memref<1x96xf32, #tpu.memory_space<vmem>>, vector<1x96xf32>
    %4 = vector.broadcast %3 : vector<1x96xf32> to vector<16x96xf32>
    %5 = arith.addf %2, %4 : vector<16x96xf32>
    %c0_5 = arith.constant 0 : index
    %c0_6 = arith.constant 0 : index
    %6 = vector.load %arg3[%c0_5, %c0_6] : memref<32x96xf32, #tpu.memory_space<vmem>>, vector<32x96xf32>
    %c0_7 = arith.constant 0 : index
    %c0_8 = arith.constant 0 : index
    %7 = vector.load %arg4[%c0_7, %c0_8] : memref<1x32xf32, #tpu.memory_space<vmem>>, vector<1x32xf32>
    %8 = vector.shape_cast %7 : vector<1x32xf32> to vector<1x32xf32>
    %9 = vector.broadcast %8 : vector<1x32xf32> to vector<2x32xf32>
    %cst_9 = arith.constant 0.000000e+00 : f32
    %10 = vector.broadcast %cst_9 : f32 to vector<2x32xf32>
    %11 = vector.extract_strided_slice %5 {offsets = [0, 0], sizes = [2, 96], strides = [1, 1]} : vector<16x96xf32> to vector<2x96xf32>
    %cst_10 = arith.constant dense<0.000000e+00> : vector<2x96xf32>
    %12 = tpu.matmul %10, %6, %cst_10 {dimension_numbers = #tpu.dot_dimension_numbers<[1], [0], [0], [1], [0, 0, 1, 1], [], []>} : vector<2x32xf32>, vector<32x96xf32>, vector<2x96xf32> -> vector<2x96xf32>
    %13 = vector.extract_strided_slice %11 {offsets = [0, 0], sizes = [2, 64], strides = [1, 1]} : vector<2x96xf32> to vector<2x64xf32>
    %14 = vector.extract_strided_slice %12 {offsets = [0, 0], sizes = [2, 64], strides = [1, 1]} : vector<2x96xf32> to vector<2x64xf32>
    %15 = arith.addf %13, %14 : vector<2x64xf32>
    %16 = arith.negf %15 : vector<2x64xf32>
    %17 = math.exp %16 : vector<2x64xf32>
    %cst_11 = arith.constant 1.000000e+00 : f32
    %18 = vector.broadcast %cst_11 : f32 to vector<2x64xf32>
    %19 = arith.addf %18, %17 : vector<2x64xf32>
    %20 = arith.divf %18, %19 : vector<2x64xf32>
    %21 = vector.extract_strided_slice %20 {offsets = [0, 0], sizes = [2, 32], strides = [1, 1]} : vector<2x64xf32> to vector<2x32xf32>
    %22 = vector.extract_strided_slice %20 {offsets = [0, 32], sizes = [2, 32], strides = [1, 1]} : vector<2x64xf32> to vector<2x32xf32>
    %23 = vector.extract_strided_slice %11 {offsets = [0, 64], sizes = [2, 32], strides = [1, 1]} : vector<2x96xf32> to vector<2x32xf32>
    %24 = vector.extract_strided_slice %12 {offsets = [0, 64], sizes = [2, 32], strides = [1, 1]} : vector<2x96xf32> to vector<2x32xf32>
    %25 = arith.addf %24, %9 : vector<2x32xf32>
    %26 = arith.mulf %21, %25 : vector<2x32xf32>
    %27 = arith.addf %23, %26 : vector<2x32xf32>
    %28 = math.tanh %27 : vector<2x32xf32>
    %cst_12 = arith.constant 1.000000e+00 : f32
    %29 = vector.broadcast %cst_12 : f32 to vector<2x32xf32>
    %30 = arith.subf %29, %22 : vector<2x32xf32>
    %31 = arith.mulf %30, %28 : vector<2x32xf32>
    %32 = arith.mulf %22, %10 : vector<2x32xf32>
    %33 = arith.addf %31, %32 : vector<2x32xf32>
    %34 = vector.extract_strided_slice %5 {offsets = [2, 0], sizes = [2, 96], strides = [1, 1]} : vector<16x96xf32> to vector<2x96xf32>
    %cst_13 = arith.constant dense<0.000000e+00> : vector<2x96xf32>
    %35 = tpu.matmul %33, %6, %cst_13 {dimension_numbers = #tpu.dot_dimension_numbers<[1], [0], [0], [1], [0, 0, 1, 1], [], []>} : vector<2x32xf32>, vector<32x96xf32>, vector<2x96xf32> -> vector<2x96xf32>
    %36 = vector.extract_strided_slice %34 {offsets = [0, 0], sizes = [2, 64], strides = [1, 1]} : vector<2x96xf32> to vector<2x64xf32>
    %37 = vector.extract_strided_slice %35 {offsets = [0, 0], sizes = [2, 64], strides = [1, 1]} : vector<2x96xf32> to vector<2x64xf32>
    %38 = arith.addf %36, %37 : vector<2x64xf32>
    %39 = arith.negf %38 : vector<2x64xf32>
    %40 = math.exp %39 : vector<2x64xf32>
    %cst_14 = arith.constant 1.000000e+00 : f32
    %41 = vector.broadcast %cst_14 : f32 to vector<2x64xf32>
    %42 = arith.addf %41, %40 : vector<2x64xf32>
    %43 = arith.divf %41, %42 : vector<2x64xf32>
    %44 = vector.extract_strided_slice %43 {offsets = [0, 0], sizes = [2, 32], strides = [1, 1]} : vector<2x64xf32> to vector<2x32xf32>
    %45 = vector.extract_strided_slice %43 {offsets = [0, 32], sizes = [2, 32], strides = [1, 1]} : vector<2x64xf32> to vector<2x32xf32>
    %46 = vector.extract_strided_slice %34 {offsets = [0, 64], sizes = [2, 32], strides = [1, 1]} : vector<2x96xf32> to vector<2x32xf32>
    %47 = vector.extract_strided_slice %35 {offsets = [0, 64], sizes = [2, 32], strides = [1, 1]} : vector<2x96xf32> to vector<2x32xf32>
    %48 = arith.addf %47, %9 : vector<2x32xf32>
    %49 = arith.mulf %44, %48 : vector<2x32xf32>
    %50 = arith.addf %46, %49 : vector<2x32xf32>
    %51 = math.tanh %50 : vector<2x32xf32>
    %cst_15 = arith.constant 1.000000e+00 : f32
    %52 = vector.broadcast %cst_15 : f32 to vector<2x32xf32>
    %53 = arith.subf %52, %45 : vector<2x32xf32>
    %54 = arith.mulf %53, %51 : vector<2x32xf32>
    %55 = arith.mulf %45, %33 : vector<2x32xf32>
    %56 = arith.addf %54, %55 : vector<2x32xf32>
    %57 = vector.extract_strided_slice %5 {offsets = [4, 0], sizes = [2, 96], strides = [1, 1]} : vector<16x96xf32> to vector<2x96xf32>
    %cst_16 = arith.constant dense<0.000000e+00> : vector<2x96xf32>
    %58 = tpu.matmul %56, %6, %cst_16 {dimension_numbers = #tpu.dot_dimension_numbers<[1], [0], [0], [1], [0, 0, 1, 1], [], []>} : vector<2x32xf32>, vector<32x96xf32>, vector<2x96xf32> -> vector<2x96xf32>
    %59 = vector.extract_strided_slice %57 {offsets = [0, 0], sizes = [2, 64], strides = [1, 1]} : vector<2x96xf32> to vector<2x64xf32>
    %60 = vector.extract_strided_slice %58 {offsets = [0, 0], sizes = [2, 64], strides = [1, 1]} : vector<2x96xf32> to vector<2x64xf32>
    %61 = arith.addf %59, %60 : vector<2x64xf32>
    %62 = arith.negf %61 : vector<2x64xf32>
    %63 = math.exp %62 : vector<2x64xf32>
    %cst_17 = arith.constant 1.000000e+00 : f32
    %64 = vector.broadcast %cst_17 : f32 to vector<2x64xf32>
    %65 = arith.addf %64, %63 : vector<2x64xf32>
    %66 = arith.divf %64, %65 : vector<2x64xf32>
    %67 = vector.extract_strided_slice %66 {offsets = [0, 0], sizes = [2, 32], strides = [1, 1]} : vector<2x64xf32> to vector<2x32xf32>
    %68 = vector.extract_strided_slice %66 {offsets = [0, 32], sizes = [2, 32], strides = [1, 1]} : vector<2x64xf32> to vector<2x32xf32>
    %69 = vector.extract_strided_slice %57 {offsets = [0, 64], sizes = [2, 32], strides = [1, 1]} : vector<2x96xf32> to vector<2x32xf32>
    %70 = vector.extract_strided_slice %58 {offsets = [0, 64], sizes = [2, 32], strides = [1, 1]} : vector<2x96xf32> to vector<2x32xf32>
    %71 = arith.addf %70, %9 : vector<2x32xf32>
    %72 = arith.mulf %67, %71 : vector<2x32xf32>
    %73 = arith.addf %69, %72 : vector<2x32xf32>
    %74 = math.tanh %73 : vector<2x32xf32>
    %cst_18 = arith.constant 1.000000e+00 : f32
    %75 = vector.broadcast %cst_18 : f32 to vector<2x32xf32>
    %76 = arith.subf %75, %68 : vector<2x32xf32>
    %77 = arith.mulf %76, %74 : vector<2x32xf32>
    %78 = arith.mulf %68, %56 : vector<2x32xf32>
    %79 = arith.addf %77, %78 : vector<2x32xf32>
    %80 = vector.extract_strided_slice %5 {offsets = [6, 0], sizes = [2, 96], strides = [1, 1]} : vector<16x96xf32> to vector<2x96xf32>
    %cst_19 = arith.constant dense<0.000000e+00> : vector<2x96xf32>
    %81 = tpu.matmul %79, %6, %cst_19 {dimension_numbers = #tpu.dot_dimension_numbers<[1], [0], [0], [1], [0, 0, 1, 1], [], []>} : vector<2x32xf32>, vector<32x96xf32>, vector<2x96xf32> -> vector<2x96xf32>
    %82 = vector.extract_strided_slice %80 {offsets = [0, 0], sizes = [2, 64], strides = [1, 1]} : vector<2x96xf32> to vector<2x64xf32>
    %83 = vector.extract_strided_slice %81 {offsets = [0, 0], sizes = [2, 64], strides = [1, 1]} : vector<2x96xf32> to vector<2x64xf32>
    %84 = arith.addf %82, %83 : vector<2x64xf32>
    %85 = arith.negf %84 : vector<2x64xf32>
    %86 = math.exp %85 : vector<2x64xf32>
    %cst_20 = arith.constant 1.000000e+00 : f32
    %87 = vector.broadcast %cst_20 : f32 to vector<2x64xf32>
    %88 = arith.addf %87, %86 : vector<2x64xf32>
    %89 = arith.divf %87, %88 : vector<2x64xf32>
    %90 = vector.extract_strided_slice %89 {offsets = [0, 0], sizes = [2, 32], strides = [1, 1]} : vector<2x64xf32> to vector<2x32xf32>
    %91 = vector.extract_strided_slice %89 {offsets = [0, 32], sizes = [2, 32], strides = [1, 1]} : vector<2x64xf32> to vector<2x32xf32>
    %92 = vector.extract_strided_slice %80 {offsets = [0, 64], sizes = [2, 32], strides = [1, 1]} : vector<2x96xf32> to vector<2x32xf32>
    %93 = vector.extract_strided_slice %81 {offsets = [0, 64], sizes = [2, 32], strides = [1, 1]} : vector<2x96xf32> to vector<2x32xf32>
    %94 = arith.addf %93, %9 : vector<2x32xf32>
    %95 = arith.mulf %90, %94 : vector<2x32xf32>
    %96 = arith.addf %92, %95 : vector<2x32xf32>
    %97 = math.tanh %96 : vector<2x32xf32>
    %cst_21 = arith.constant 1.000000e+00 : f32
    %98 = vector.broadcast %cst_21 : f32 to vector<2x32xf32>
    %99 = arith.subf %98, %91 : vector<2x32xf32>
    %100 = arith.mulf %99, %97 : vector<2x32xf32>
    %101 = arith.mulf %91, %79 : vector<2x32xf32>
    %102 = arith.addf %100, %101 : vector<2x32xf32>
    %103 = vector.extract_strided_slice %5 {offsets = [8, 0], sizes = [2, 96], strides = [1, 1]} : vector<16x96xf32> to vector<2x96xf32>
    %cst_22 = arith.constant dense<0.000000e+00> : vector<2x96xf32>
    %104 = tpu.matmul %102, %6, %cst_22 {dimension_numbers = #tpu.dot_dimension_numbers<[1], [0], [0], [1], [0, 0, 1, 1], [], []>} : vector<2x32xf32>, vector<32x96xf32>, vector<2x96xf32> -> vector<2x96xf32>
    %105 = vector.extract_strided_slice %103 {offsets = [0, 0], sizes = [2, 64], strides = [1, 1]} : vector<2x96xf32> to vector<2x64xf32>
    %106 = vector.extract_strided_slice %104 {offsets = [0, 0], sizes = [2, 64], strides = [1, 1]} : vector<2x96xf32> to vector<2x64xf32>
    %107 = arith.addf %105, %106 : vector<2x64xf32>
    %108 = arith.negf %107 : vector<2x64xf32>
    %109 = math.exp %108 : vector<2x64xf32>
    %cst_23 = arith.constant 1.000000e+00 : f32
    %110 = vector.broadcast %cst_23 : f32 to vector<2x64xf32>
    %111 = arith.addf %110, %109 : vector<2x64xf32>
    %112 = arith.divf %110, %111 : vector<2x64xf32>
    %113 = vector.extract_strided_slice %112 {offsets = [0, 0], sizes = [2, 32], strides = [1, 1]} : vector<2x64xf32> to vector<2x32xf32>
    %114 = vector.extract_strided_slice %112 {offsets = [0, 32], sizes = [2, 32], strides = [1, 1]} : vector<2x64xf32> to vector<2x32xf32>
    %115 = vector.extract_strided_slice %103 {offsets = [0, 64], sizes = [2, 32], strides = [1, 1]} : vector<2x96xf32> to vector<2x32xf32>
    %116 = vector.extract_strided_slice %104 {offsets = [0, 64], sizes = [2, 32], strides = [1, 1]} : vector<2x96xf32> to vector<2x32xf32>
    %117 = arith.addf %116, %9 : vector<2x32xf32>
    %118 = arith.mulf %113, %117 : vector<2x32xf32>
    %119 = arith.addf %115, %118 : vector<2x32xf32>
    %120 = math.tanh %119 : vector<2x32xf32>
    %cst_24 = arith.constant 1.000000e+00 : f32
    %121 = vector.broadcast %cst_24 : f32 to vector<2x32xf32>
    %122 = arith.subf %121, %114 : vector<2x32xf32>
    %123 = arith.mulf %122, %120 : vector<2x32xf32>
    %124 = arith.mulf %114, %102 : vector<2x32xf32>
    %125 = arith.addf %123, %124 : vector<2x32xf32>
    %126 = vector.extract_strided_slice %5 {offsets = [10, 0], sizes = [2, 96], strides = [1, 1]} : vector<16x96xf32> to vector<2x96xf32>
    %cst_25 = arith.constant dense<0.000000e+00> : vector<2x96xf32>
    %127 = tpu.matmul %125, %6, %cst_25 {dimension_numbers = #tpu.dot_dimension_numbers<[1], [0], [0], [1], [0, 0, 1, 1], [], []>} : vector<2x32xf32>, vector<32x96xf32>, vector<2x96xf32> -> vector<2x96xf32>
    %128 = vector.extract_strided_slice %126 {offsets = [0, 0], sizes = [2, 64], strides = [1, 1]} : vector<2x96xf32> to vector<2x64xf32>
    %129 = vector.extract_strided_slice %127 {offsets = [0, 0], sizes = [2, 64], strides = [1, 1]} : vector<2x96xf32> to vector<2x64xf32>
    %130 = arith.addf %128, %129 : vector<2x64xf32>
    %131 = arith.negf %130 : vector<2x64xf32>
    %132 = math.exp %131 : vector<2x64xf32>
    %cst_26 = arith.constant 1.000000e+00 : f32
    %133 = vector.broadcast %cst_26 : f32 to vector<2x64xf32>
    %134 = arith.addf %133, %132 : vector<2x64xf32>
    %135 = arith.divf %133, %134 : vector<2x64xf32>
    %136 = vector.extract_strided_slice %135 {offsets = [0, 0], sizes = [2, 32], strides = [1, 1]} : vector<2x64xf32> to vector<2x32xf32>
    %137 = vector.extract_strided_slice %135 {offsets = [0, 32], sizes = [2, 32], strides = [1, 1]} : vector<2x64xf32> to vector<2x32xf32>
    %138 = vector.extract_strided_slice %126 {offsets = [0, 64], sizes = [2, 32], strides = [1, 1]} : vector<2x96xf32> to vector<2x32xf32>
    %139 = vector.extract_strided_slice %127 {offsets = [0, 64], sizes = [2, 32], strides = [1, 1]} : vector<2x96xf32> to vector<2x32xf32>
    %140 = arith.addf %139, %9 : vector<2x32xf32>
    %141 = arith.mulf %136, %140 : vector<2x32xf32>
    %142 = arith.addf %138, %141 : vector<2x32xf32>
    %143 = math.tanh %142 : vector<2x32xf32>
    %cst_27 = arith.constant 1.000000e+00 : f32
    %144 = vector.broadcast %cst_27 : f32 to vector<2x32xf32>
    %145 = arith.subf %144, %137 : vector<2x32xf32>
    %146 = arith.mulf %145, %143 : vector<2x32xf32>
    %147 = arith.mulf %137, %125 : vector<2x32xf32>
    %148 = arith.addf %146, %147 : vector<2x32xf32>
    %149 = vector.extract_strided_slice %5 {offsets = [12, 0], sizes = [2, 96], strides = [1, 1]} : vector<16x96xf32> to vector<2x96xf32>
    %cst_28 = arith.constant dense<0.000000e+00> : vector<2x96xf32>
    %150 = tpu.matmul %148, %6, %cst_28 {dimension_numbers = #tpu.dot_dimension_numbers<[1], [0], [0], [1], [0, 0, 1, 1], [], []>} : vector<2x32xf32>, vector<32x96xf32>, vector<2x96xf32> -> vector<2x96xf32>
    %151 = vector.extract_strided_slice %149 {offsets = [0, 0], sizes = [2, 64], strides = [1, 1]} : vector<2x96xf32> to vector<2x64xf32>
    %152 = vector.extract_strided_slice %150 {offsets = [0, 0], sizes = [2, 64], strides = [1, 1]} : vector<2x96xf32> to vector<2x64xf32>
    %153 = arith.addf %151, %152 : vector<2x64xf32>
    %154 = arith.negf %153 : vector<2x64xf32>
    %155 = math.exp %154 : vector<2x64xf32>
    %cst_29 = arith.constant 1.000000e+00 : f32
    %156 = vector.broadcast %cst_29 : f32 to vector<2x64xf32>
    %157 = arith.addf %156, %155 : vector<2x64xf32>
    %158 = arith.divf %156, %157 : vector<2x64xf32>
    %159 = vector.extract_strided_slice %158 {offsets = [0, 0], sizes = [2, 32], strides = [1, 1]} : vector<2x64xf32> to vector<2x32xf32>
    %160 = vector.extract_strided_slice %158 {offsets = [0, 32], sizes = [2, 32], strides = [1, 1]} : vector<2x64xf32> to vector<2x32xf32>
    %161 = vector.extract_strided_slice %149 {offsets = [0, 64], sizes = [2, 32], strides = [1, 1]} : vector<2x96xf32> to vector<2x32xf32>
    %162 = vector.extract_strided_slice %150 {offsets = [0, 64], sizes = [2, 32], strides = [1, 1]} : vector<2x96xf32> to vector<2x32xf32>
    %163 = arith.addf %162, %9 : vector<2x32xf32>
    %164 = arith.mulf %159, %163 : vector<2x32xf32>
    %165 = arith.addf %161, %164 : vector<2x32xf32>
    %166 = math.tanh %165 : vector<2x32xf32>
    %cst_30 = arith.constant 1.000000e+00 : f32
    %167 = vector.broadcast %cst_30 : f32 to vector<2x32xf32>
    %168 = arith.subf %167, %160 : vector<2x32xf32>
    %169 = arith.mulf %168, %166 : vector<2x32xf32>
    %170 = arith.mulf %160, %148 : vector<2x32xf32>
    %171 = arith.addf %169, %170 : vector<2x32xf32>
    %172 = vector.extract_strided_slice %5 {offsets = [14, 0], sizes = [2, 96], strides = [1, 1]} : vector<16x96xf32> to vector<2x96xf32>
    %cst_31 = arith.constant dense<0.000000e+00> : vector<2x96xf32>
    %173 = tpu.matmul %171, %6, %cst_31 {dimension_numbers = #tpu.dot_dimension_numbers<[1], [0], [0], [1], [0, 0, 1, 1], [], []>} : vector<2x32xf32>, vector<32x96xf32>, vector<2x96xf32> -> vector<2x96xf32>
    %174 = vector.extract_strided_slice %172 {offsets = [0, 0], sizes = [2, 64], strides = [1, 1]} : vector<2x96xf32> to vector<2x64xf32>
    %175 = vector.extract_strided_slice %173 {offsets = [0, 0], sizes = [2, 64], strides = [1, 1]} : vector<2x96xf32> to vector<2x64xf32>
    %176 = arith.addf %174, %175 : vector<2x64xf32>
    %177 = arith.negf %176 : vector<2x64xf32>
    %178 = math.exp %177 : vector<2x64xf32>
    %cst_32 = arith.constant 1.000000e+00 : f32
    %179 = vector.broadcast %cst_32 : f32 to vector<2x64xf32>
    %180 = arith.addf %179, %178 : vector<2x64xf32>
    %181 = arith.divf %179, %180 : vector<2x64xf32>
    %182 = vector.extract_strided_slice %181 {offsets = [0, 0], sizes = [2, 32], strides = [1, 1]} : vector<2x64xf32> to vector<2x32xf32>
    %183 = vector.extract_strided_slice %181 {offsets = [0, 32], sizes = [2, 32], strides = [1, 1]} : vector<2x64xf32> to vector<2x32xf32>
    %184 = vector.extract_strided_slice %172 {offsets = [0, 64], sizes = [2, 32], strides = [1, 1]} : vector<2x96xf32> to vector<2x32xf32>
    %185 = vector.extract_strided_slice %173 {offsets = [0, 64], sizes = [2, 32], strides = [1, 1]} : vector<2x96xf32> to vector<2x32xf32>
    %186 = arith.addf %185, %9 : vector<2x32xf32>
    %187 = arith.mulf %182, %186 : vector<2x32xf32>
    %188 = arith.addf %184, %187 : vector<2x32xf32>
    %189 = math.tanh %188 : vector<2x32xf32>
    %cst_33 = arith.constant 1.000000e+00 : f32
    %190 = vector.broadcast %cst_33 : f32 to vector<2x32xf32>
    %191 = arith.subf %190, %183 : vector<2x32xf32>
    %192 = arith.mulf %191, %189 : vector<2x32xf32>
    %193 = arith.mulf %183, %171 : vector<2x32xf32>
    %194 = arith.addf %192, %193 : vector<2x32xf32>
    %195 = vector.extract_strided_slice %33 {offsets = [0, 0], sizes = [2, 16], strides = [1, 1]} : vector<2x32xf32> to vector<2x16xf32>
    %196 = vector.extract_strided_slice %56 {offsets = [0, 0], sizes = [2, 16], strides = [1, 1]} : vector<2x32xf32> to vector<2x16xf32>
    %197 = vector.extract_strided_slice %79 {offsets = [0, 0], sizes = [2, 16], strides = [1, 1]} : vector<2x32xf32> to vector<2x16xf32>
    %198 = vector.extract_strided_slice %102 {offsets = [0, 0], sizes = [2, 16], strides = [1, 1]} : vector<2x32xf32> to vector<2x16xf32>
    %199 = vector.extract_strided_slice %125 {offsets = [0, 0], sizes = [2, 16], strides = [1, 1]} : vector<2x32xf32> to vector<2x16xf32>
    %200 = vector.extract_strided_slice %148 {offsets = [0, 0], sizes = [2, 16], strides = [1, 1]} : vector<2x32xf32> to vector<2x16xf32>
    %201 = vector.extract_strided_slice %171 {offsets = [0, 0], sizes = [2, 16], strides = [1, 1]} : vector<2x32xf32> to vector<2x16xf32>
    %202 = vector.extract_strided_slice %194 {offsets = [0, 0], sizes = [2, 16], strides = [1, 1]} : vector<2x32xf32> to vector<2x16xf32>
    %203 = vector.shape_cast %195 : vector<2x16xf32> to vector<1x2x16xf32>
    %204 = vector.shape_cast %196 : vector<2x16xf32> to vector<1x2x16xf32>
    %205 = vector.shape_cast %197 : vector<2x16xf32> to vector<1x2x16xf32>
    %206 = vector.shape_cast %198 : vector<2x16xf32> to vector<1x2x16xf32>
    %207 = vector.shape_cast %199 : vector<2x16xf32> to vector<1x2x16xf32>
    %208 = vector.shape_cast %200 : vector<2x16xf32> to vector<1x2x16xf32>
    %209 = vector.shape_cast %201 : vector<2x16xf32> to vector<1x2x16xf32>
    %210 = vector.shape_cast %202 : vector<2x16xf32> to vector<1x2x16xf32>
    %211 = tpu.concatenate %203, %204, %205, %206, %207, %208, %209, %210 in 0 : vector<1x2x16xf32>, vector<1x2x16xf32>, vector<1x2x16xf32>, vector<1x2x16xf32>, vector<1x2x16xf32>, vector<1x2x16xf32>, vector<1x2x16xf32>, vector<1x2x16xf32> -> vector<8x2x16xf32>
    %c0_34 = arith.constant 0 : index
    %c0_35 = arith.constant 0 : index
    %c0_36 = arith.constant 0 : index
    %212 = vector.load %arg7[%c0_34, %c0_35, %c0_36] : memref<8x2x32xf32, #tpu.memory_space<vmem>>, vector<8x2x16xf32>
    tpu.vector_store %arg7[%c0_34, %c0_35, %c0_36], %211 {strides = array<i32>} : memref<8x2x32xf32, #tpu.memory_space<vmem>>, vector<8x2x16xf32>,
    %213 = vector.extract_strided_slice %194 {offsets = [0, 16], sizes = [2, 16], strides = [1, 1]} : vector<2x32xf32> to vector<2x16xf32>
    %214 = vector.extract_strided_slice %171 {offsets = [0, 16], sizes = [2, 16], strides = [1, 1]} : vector<2x32xf32> to vector<2x16xf32>
    %215 = vector.extract_strided_slice %148 {offsets = [0, 16], sizes = [2, 16], strides = [1, 1]} : vector<2x32xf32> to vector<2x16xf32>
    %216 = vector.extract_strided_slice %125 {offsets = [0, 16], sizes = [2, 16], strides = [1, 1]} : vector<2x32xf32> to vector<2x16xf32>
    %217 = vector.extract_strided_slice %102 {offsets = [0, 16], sizes = [2, 16], strides = [1, 1]} : vector<2x32xf32> to vector<2x16xf32>
    %218 = vector.extract_strided_slice %79 {offsets = [0, 16], sizes = [2, 16], strides = [1, 1]} : vector<2x32xf32> to vector<2x16xf32>
    %219 = vector.extract_strided_slice %56 {offsets = [0, 16], sizes = [2, 16], strides = [1, 1]} : vector<2x32xf32> to vector<2x16xf32>
    %220 = vector.extract_strided_slice %33 {offsets = [0, 16], sizes = [2, 16], strides = [1, 1]} : vector<2x32xf32> to vector<2x16xf32>
    %221 = vector.shape_cast %213 : vector<2x16xf32> to vector<1x2x16xf32>
    %222 = vector.shape_cast %214 : vector<2x16xf32> to vector<1x2x16xf32>
    %223 = vector.shape_cast %215 : vector<2x16xf32> to vector<1x2x16xf32>
    %224 = vector.shape_cast %216 : vector<2x16xf32> to vector<1x2x16xf32>
    %225 = vector.shape_cast %217 : vector<2x16xf32> to vector<1x2x16xf32>
    %226 = vector.shape_cast %218 : vector<2x16xf32> to vector<1x2x16xf32>
    %227 = vector.shape_cast %219 : vector<2x16xf32> to vector<1x2x16xf32>
    %228 = vector.shape_cast %220 : vector<2x16xf32> to vector<1x2x16xf32>
    %229 = tpu.concatenate %221, %222, %223, %224, %225, %226, %227, %228 in 0 : vector<1x2x16xf32>, vector<1x2x16xf32>, vector<1x2x16xf32>, vector<1x2x16xf32>, vector<1x2x16xf32>, vector<1x2x16xf32>, vector<1x2x16xf32>, vector<1x2x16xf32> -> vector<8x2x16xf32>
    %c0_37 = arith.constant 0 : index
    %c0_38 = arith.constant 0 : index
    %c16 = arith.constant 16 : index
    %230 = vector.load %arg7[%c0_37, %c0_38, %c16] : memref<8x2x32xf32, #tpu.memory_space<vmem>>, vector<8x2x16xf32>
    tpu.vector_store %arg7[%c0_37, %c0_38, %c16], %229 {strides = array<i32>} : memref<8x2x32xf32, #tpu.memory_space<vmem>>, vector<8x2x16xf32>,
    %c0_39 = arith.constant 0 : index
    %c0_40 = arith.constant 0 : index
    %231 = vector.load %arg5[%c0_39, %c0_40] : memref<32x32xf32, #tpu.memory_space<vmem>>, vector<32x32xf32>
    %cst_41 = arith.constant dense<0.000000e+00> : vector<2x32xf32>
    %232 = tpu.matmul %194, %231, %cst_41 {dimension_numbers = #tpu.dot_dimension_numbers<[1], [0], [0], [1], [0, 0, 1, 1], [], []>} : vector<2x32xf32>, vector<32x32xf32>, vector<2x32xf32> -> vector<2x32xf32>
    %c0_42 = arith.constant 0 : index
    %c0_43 = arith.constant 0 : index
    %233 = vector.load %arg6[%c0_42, %c0_43] : memref<1x32xf32, #tpu.memory_space<vmem>>, vector<1x32xf32>
    %234 = vector.broadcast %233 : vector<1x32xf32> to vector<2x32xf32>
    %235 = arith.addf %232, %234 : vector<2x32xf32>
    %236 = math.tanh %235 : vector<2x32xf32>
    %c0_44 = arith.constant 0 : index
    %c0_45 = arith.constant 0 : index
    %237 = vector.load %arg8[%c0_44, %c0_45] : memref<2x32xf32, #tpu.memory_space<vmem>>, vector<2x32xf32>
    tpu.vector_store %arg8[%c0_44, %c0_45], %236 {strides = array<i32>} : memref<2x32xf32, #tpu.memory_space<vmem>>, vector<2x32xf32>,
    return
  }
}

</mosaic_0001>

<bundles_post_ra>
// kernel: tpu_custom_call.1
= control target key start
LH: loop header
LB: loop body
LE: loop exit
PB: predicated region body
PF: predicated region fallthrough
CT: control target
= control target key end

     0   :  { %14 = vsyncpa [#allocation3], 0  ;;  %s1941_s0 = inlined_call_operand.hbm [shape: f32[16,64], index: 0, kind: input, shape index: {}]   ;;  %s1942_s1 = inlined_call_operand.hbm [shape: f32[64,96], index: 1, kind: input, shape index: {}]   ;;  %s1943_s2 = inlined_call_operand.vmem [shape: f32[1,96], index: 2, kind: input, shape index: {}]   ;;  %s1944_s3 = inlined_call_operand.hbm [shape: f32[32,96], index: 3, kind: input, shape index: {}]   ;;  %s1945_s4 = inlined_call_operand.vmem [shape: f32[1,32], index: 4, kind: input, shape index: {}]   ;;  %s1946_s5 = inlined_call_operand.hbm [shape: f32[32,32], index: 5, kind: input, shape index: {}]   ;;  %s1947_s6 = inlined_call_operand.vmem [shape: f32[1,32], index: 6, kind: input, shape index: {}]   ;;  %s1948_s7 = inlined_call_operand.hbm [shape: f32[8,2,32], index: 7, kind: output, shape index: {0}]   ;;  %s1949_s8 = inlined_call_operand.hbm [shape: f32[2,32], index: 8, kind: output, shape index: {1}]  }
   0x1   :  { %15 = vsyncpa [#allocation6], 0 }
   0x2   :  { %16 = vsyncpa [#allocation9], 0 }
   0x3   :  { %17 = vsyncpa [#allocation4], 0 }
   0x4   :  { %18 = vsyncpa [#allocation12], 0  ;;  %s1619_s27 = smov [#allocation5]   ;;  %s1620_s29 = smov [#allocation2]  }
   0x5   :  { %s36_s28 = sshll.u32 %s1619_s27, 4  ;;  %s24_s30 = sshll.u32 %s1620_s29, 4  ;;  %s37_s28 = int_to_ptr.vmem [resolvable:$true] %s36_s28  ;;  %s25_s30 = int_to_ptr.vmem [resolvable:$true] %s24_s30 }
   0x6   :  { %s1497_s9 = scalar_lea.vmem %s37_s28, 1024  ;;  %p1502_p1 = scmp.lt.s32.totalorder %s37_s28, %s37_s28 }
   0x7   :  { %p1498_p0 = scmp.ne.s32.totalorder %s37_s28, %s1497_s9  ;;  %p1503_p2 = scmp.lt.s32.totalorder %s1497_s9, %s1497_s9 }
   0x9   :  { %p1504_p3 = por %p1503_p2, %p1502_p1 }
   0xb   :  { %p1505_p4 = pnand %p1504_p3, %p1498_p0 }
   0xd   :  { %1508 = shalt.err (!%p1505_p4)
}
   0xe   :  { %s1621_s10 = smov 128   ;;  %s1622_s11 = smov 8  }
   0xf   :  { %42 = dma.hbm_to_vmem [thread:$0]  %s1942_s1, 1024, %s37_s28, [#allocation6], %s1621_s10, %s1621_s10, %s1622_s11  }
  0x10   :  { %s1517_s14 = scalar_lea.vmem %s25_s30, 256  ;;  %p1522_p6 = scmp.lt.s32.totalorder %s25_s30, %s25_s30 }
  0x11   :  { %p1518_p5 = scmp.ne.s32.totalorder %s25_s30, %s1517_s14  ;;  %p1523_p7 = scmp.lt.s32.totalorder %s1517_s14, %s1517_s14 }
  0x13   :  { %p1524_p8 = por %p1523_p7, %p1522_p6 }
  0x15   :  { %p1525_p9 = pnand %p1524_p8, %p1518_p5 }
  0x17   :  { %1528 = shalt.err (!%p1525_p9)
}
  0x18   :  { %30 = dma.hbm_to_vmem [thread:$0]  %s1941_s0, 256, %s25_s30, [#allocation3], %s1621_s10, %s1621_s10, %s1622_s11  }
  0x19   :  { %s1623_s17 = smov [#allocation7]   ;;  %s1624_s19 = smov [#allocation8]  }
  0x1a   :  { %s50_s18 = sshll.u32 %s1623_s17, 4  ;;  %s64_s20 = sshll.u32 %s1624_s19, 4  ;;  %s51_s18 = int_to_ptr.vmem [resolvable:$true] %s50_s18  ;;  %s65_s20 = int_to_ptr.vmem [resolvable:$true] %s64_s20 }
  0x1b   :  { %s1537_s1 = scalar_lea.vmem %s51_s18, 512  ;;  %p1542_p11 = scmp.lt.s32.totalorder %s51_s18, %s51_s18 }
  0x1c   :  { %p1538_p10 = scmp.ne.s32.totalorder %s51_s18, %s1537_s1  ;;  %p1543_p12 = scmp.lt.s32.totalorder %s1537_s1, %s1537_s1 }
  0x1e   :  { %p1544_p13 = por %p1543_p12, %p1542_p11 }
  0x20   :  { %p1545_p0 = pnand %p1544_p13, %p1538_p10 }
  0x22   :  { %1548 = shalt.err (!%p1545_p0)
}
  0x23   :  { %56 = dma.hbm_to_vmem [thread:$0]  %s1944_s3, 512, %s51_s18, [#allocation6], %s1621_s10, %s1621_s10, %s1622_s11  }
  0x24   :  { %s1557_s0 = scalar_lea.vmem %s65_s20, 512  ;;  %p1562_p2 = scmp.lt.s32.totalorder %s65_s20, %s65_s20 }
  0x25   :  { %p1558_p1 = scmp.ne.s32.totalorder %s65_s20, %s1557_s0  ;;  %p1563_p3 = scmp.lt.s32.totalorder %s1557_s0, %s1557_s0 }
  0x27   :  { %p1564_p4 = por %p1563_p3, %p1562_p2 }
  0x29   :  { %p1565_p5 = pnand %p1564_p4, %p1558_p1 }
  0x2b   :  { %1568 = shalt.err (!%p1565_p5)
}
  0x2c   :  { %70 = dma.hbm_to_vmem [thread:$0]  %s1946_s5, 512, %s65_s20, [#allocation9], %s1621_s10, %s1621_s10, %s1622_s11  }
  0x2d   :  { %1609 = dma.done.wait [#allocation3], 256  }
  0x2e   :  { %1610 = vsyncadd [#allocation3], 4294967040 }
  0x2f   :  { %1611 = dma.done.wait [#allocation6], 1536  }
  0x30   :  { %1612 = vsyncadd [#allocation6], 4294965760 }
  0x31   :  { %1613 = dma.done.wait [#allocation9], 512  }
  0x32   :  { %1614 = vsyncadd [#allocation9], 4294966784  ;;  %v1625_v0 = vmov 0.0   ;;  %vm1626_vm0 = vmmov 0   ;;  %v94_v1 = vld [vmem:[#allocation5 + $0x38] sm:$0xff]  ;;  %v93_v3 = vld [vmem:[#allocation5 + $0x30] sm:$0xff] }
  0x33   :  { %1326 = vmatprep.subr.mxu1 %v1625_v0  ;;  %1334 = vmatprep.mubr.msk.f32.mxu1 %vm1626_vm0, %v1625_v0  ;;  %v1705_v2 = vld [vmem:[#allocation7 + $0x18] sm:$0xff]  ;;  %v1708_v4 = vld [vmem:[#allocation7 + $0x10] sm:$0xff]  ;;  %v92_v5 = vld [vmem:[#allocation5 + $0x28] sm:$0xff]  ;;  %vm102_vm1 = vcmask 523264   ;;  %s1627_s25 = smov 64   ;;  %vm1066_vm2 = vcmask 123904  }
  0x34   :  { %1307 = vmatprep.subr.mxu0 %v94_v1  ;;  %1327 = vmatpush3.msra.mxu1 %v1705_v2  ;;  %v1711_v6 = vld [vmem:[#allocation7 + $0x8] sm:$0xff]  ;;  %v91_v7 = vld [vmem:[#allocation5 + $0x20] sm:$0xff]  ;;  %v90_v9 = vld [vmem:[#allocation5 + $0x18] sm:$0xff]  ;;  %vm194_vm3 = vcmask 261120   ;;  %vm1103_vm4 = vcmask 261254   ;;  %s1629_s27 = smov [#allocation10]  }
  0x35   :  { %1308 = vmatpush3.msra.mxu0 %v94_v1  ;;  %1328 = vmatprep.subr.mxu1 %v1625_v0  ;;  %v1715_v8 = vld [vmem:[#allocation7] sm:$0xff]  ;;  %v85_v10 = vld [vmem:[#allocation2] sm:$0xff]  ;;  %v88_v13 = vld [vmem:[#allocation5 + $0x8] sm:$0xff]  ;;  %s1203_s28 = sshll.u32 %s1629_s27, 4  ;;  %s1204_s28 = int_to_ptr.vmem [resolvable:$true] %s1203_s28 }
  0x36   :  { %1309 = vmatprep.subr.mxu0 %v93_v3  ;;  %1329 = vmatpush3.msra.mxu1 %v1708_v4  ;;  %v1234_v11 = vld [vmem:[%s1945_s4] ss:$0 sm:$0xff]  ;;  %v87_v14 = vld [vmem:[#allocation5] sm:$0xff]  ;;  %v86_v15 = vld [vmem:[#allocation2 + $0x8] sm:$0xff]  ;;  %s1569_s29 = scalar_lea.vmem %s1204_s28, 256  ;;  %p1574_p7 = scmp.lt.s32.totalorder %s1204_s28, %s1204_s28 }
  0x37   :  { %1310 = vmatpush3.msra.mxu0 %v93_v3  ;;  %1330 = vmatprep.subr.mxu1 %v1625_v0  ;;  %v89_v12 = vld [vmem:[#allocation5 + $0x10] sm:$0xff]  ;;  %p1570_p6 = scmp.ne.s32.totalorder %s1204_s28, %s1569_s29  ;;  %p1575_p8 = scmp.lt.s32.totalorder %s1569_s29, %s1569_s29 }
  0x38   :  { %1311 = vmatprep.subr.mxu0 %v92_v5  ;;  %1331 = vmatpush3.msra.mxu1 %v1711_v6  ;;  %v1231_v21 = vld [vmem:[%s1943_s2] ss:$0 sm:$0xff]  ;;  %s1628_s2 = smov 96  }
  0x39   :  { %1312 = vmatpush3.msra.mxu0 %v92_v5  ;;  %1332 = vmatprep.subr.mxu1 %v1625_v0  ;;  %p1576_p9 = por %p1575_p8, %p1574_p7 }
  0x3a   :  { %1313 = vmatprep.subr.mxu0 %v91_v7  ;;  %1333 = vmatpush3.msra.mxu1 %v1715_v8 }
  0x3b   :  { %1314 = vmatpush3.msra.mxu0 %v91_v7  ;;  %1335 = vmatmul.mubr.f32.vlgmr.msra.gmra.mxu1 %v1625_v0  ;;  %p1577_p10 = pnand %p1576_p9, %p1570_p6 }
  0x3c   :  { %1315 = vmatprep.subr.mxu0 %v90_v9  ;;  %1323 = vmatprep.mubr.msk.f32.mxu0 %vm102_vm1, %v85_v10 }
  0x3d   :  { %1316 = vmatpush3.msra.mxu0 %v90_v9  ;;  %275 = vrot.lane.b32.xlu0 %v1234_v11, %s1627_s25 }
  0x3e   :  { %1317 = vmatprep.subr.mxu0 %v89_v12  ;;  %1337 = vmatprep.subr.mxu1 %v1625_v0 }
  0x3f   :  { %1318 = vmatpush3.msra.mxu0 %v89_v12  ;;  %1338 = vmatpush3.msra.mxu1 %v1705_v2 }
  0x40   :  { %1319 = vmatprep.subr.mxu0 %v88_v13  ;;  %1339 = vmatprep.subr.mxu1 %v1625_v0 }
  0x41   :  { %1320 = vmatpush3.msra.mxu0 %v88_v13  ;;  %1340 = vmatpush3.msra.mxu1 %v1708_v4 }
  0x42   :  { %1321 = vmatprep.subr.mxu0 %v87_v14  ;;  %1341 = vmatprep.subr.mxu1 %v1625_v0 }
  0x43   :  { %1322 = vmatpush3.msra.mxu0 %v87_v14  ;;  %1342 = vmatpush3.msra.mxu1 %v1711_v6 }
  0x44   :  { %1324 = vmatmul.mubr.msk.f32.vlgmr.msra.gmra.mxu0 %vm102_vm1, %v86_v15  ;;  %1343 = vmatprep.subr.mxu1 %v1625_v0 }
  0x45   :  { %1344 = vmatpush3.msra.mxu1 %v1715_v8  ;;  %1345 = vmatprep.mubr.msk.f32.mxu1 %vm1626_vm0, %v1625_v0 }
  0x46   :  { %1348 = vmatprep.subr.mxu0 %v1625_v0  ;;  %1356 = vmatprep.mubr.msk.f32.mxu0 %vm1626_vm0, %v1625_v0 }
  0x47   :  { %1349 = vmatpush3.msra.mxu0 %v1705_v2  ;;  %1359 = vmatprep.subr.mxu1 %v1625_v0 }
  0x48   :  { %1350 = vmatprep.subr.mxu0 %v1625_v0 }
  0x49   :  { %1351 = vmatpush3.msra.mxu0 %v1708_v4 }
  0x4a   :  { %1352 = vmatprep.subr.mxu0 %v1625_v0 }
  0x4b   :  { %1353 = vmatpush3.msra.mxu0 %v1711_v6 }
  0x4c   :  { %1354 = vmatprep.subr.mxu0 %v1625_v0 }
  0x4d   :  { %1355 = vmatpush3.msra.mxu0 %v1715_v8 }
  0x4e   :  { %1370 = vmatprep.subr.mxu0 %v1625_v0 }
  0xaf   :  { %v1749_v16 = vpop.permute.xlu0 %275 }
  0xfb   :  { %v264_v17 = vpop.f32.mrf.mxu1 }
  0xfc   :  { %v278_v18 = vadd.f32 %v1749_v16, %v264_v17 }
  0xfd   :  { %v1336_v19 = vpop.f32.mrf.mxu1 }
  0xfe   :  { %280 = vrot.lane.b32.xlu0 %v278_v18, %s1627_s25 }
 0x104   :  { %v1325_v20 = vpop.f32.mrf.mxu0 }
 0x105   :  { %v1756_v22 = vadd.f32 %v1325_v20, %v1231_v21 }
 0x106   :  { %v175_v23 = vpop.f32.mrf.mxu0 }
 0x107   :  { %v1758_v24 = vadd.f32 %v1231_v21, %v175_v23 }
 0x109   :  { %v268_v25 = vadd.f32 %v264_v17, %v1758_v24 }
 0x10b   :  { %v1235_v26 = vmul.f32 -1.442695, %v268_v25 }
 0x10d   :  { %1439 = vpow2.f32 %v1235_v26 }
 0x11a   :  { %v1440_v27 = vpop.eup %1439 }
 0x11b   :  { %v272_v28 = vadd.f32 1.0, %v1440_v27 }
 0x11d   :  { %1441 = vrcp.f32 %v272_v28 }
 0x12a   :  { %v1442_v29 = vpop.eup %1441 }
 0x12b   :  { %v290_v35 = vsub.f32 1.0, %v1442_v29  ;;  %v296_v37 = vmul.f32 0.0, %v1442_v29 }
 0x170   :  { %v281_v30 = vpop.permute.xlu0 %280 }
 0x171   :  { %v283_v31 = vmul.f32 %v1442_v29, %v281_v30 }
 0x173   :  { %285 = vrot.lane.b32.xlu1 %v283_v31, %s1627_s25 }
 0x1e5   :  { %v286_v32 = vpop.permute.xlu1 %285 }
 0x1e6   :  { %v288_v33 = vadd.f32 %v286_v32, %v1758_v24 }
 0x1e8   :  { %1443 = vtanh.f32 %v288_v33 }
 0x1f5   :  { %v1444_v34 = vpop.eup %1443 }
 0x1f6   :  { %292 = vrot.lane.b32.xlu1 %v1444_v34, %s1628_s2 }
 0x268   :  { %v293_v36 = vpop.permute.xlu1 %292 }
 0x269   :  { %v295_v38 = vmul.f32 %v293_v36, %v290_v35 }
 0x26b   :  { %v1764_v39 = vadd.f32 %v296_v37, %v295_v38 }
 0x26d   :  { %299 = vrot.lane.b32.xlu0 %v1764_v39, %s1628_s2  ;;  %v402_v57 = vrot.slane %v1764_v39, 6 }
 0x2df   :  { %v300_v40 = vpop.permute.xlu0 %299 }
 0x2e0   :  { %1067 = vst.msk [vmem:[#allocation10] sm:$0x3] %vm1066_vm2, %v300_v40  ;;  %1346 = vmatmul.mubr.msk.f32.vlgmr.msra.gmra.mxu1 %vm194_vm3, %v300_v40 }
 0x2e1   :  { %1360 = vmatpush3.msra.mxu1 %v1705_v2  ;;  %1367 = vmatprep.mubr.msk.f32.mxu1 %vm1626_vm0, %v1625_v0 }
 0x2e2   :  { %1361 = vmatprep.subr.mxu1 %v1625_v0 }
 0x2e3   :  { %1362 = vmatpush3.msra.mxu1 %v1708_v4 }
 0x2e4   :  { %1363 = vmatprep.subr.mxu1 %v1625_v0 }
 0x2e5   :  { %1364 = vmatpush3.msra.mxu1 %v1711_v6 }
 0x2e6   :  { %1365 = vmatprep.subr.mxu1 %v1625_v0 }
 0x2e7   :  { %1366 = vmatpush3.msra.mxu1 %v1715_v8 }
 0x2e8   :  { %1381 = vmatprep.subr.mxu1 %v1625_v0 }
 0x3a0   :  { %v369_v41 = vpop.f32.mrf.mxu1 }
 0x3a1   :  { %v383_v42 = vadd.f32 %v369_v41, %v1749_v16  ;;  %v374_v45 = vrot.slane %v369_v41, 6 }
 0x3a2   :  { %v1347_v43 = vpop.f32.mrf.mxu1 }
 0x3a3   :  { %v385_v44 = vrot.slane %v383_v42, 6  ;;  %v376_v46 = vadd.f32 %v374_v45, %v1758_v24 }
 0x3a5   :  { %386 = vrot.lane.b32.xlu1 %v385_v44, %s1627_s25  ;;  %v1237_v47 = vmul.f32 -1.442695, %v376_v46 }
 0x3a7   :  { %1445 = vpow2.f32 %v1237_v47 }
 0x3b4   :  { %v1446_v48 = vpop.eup %1445 }
 0x3b5   :  { %v380_v49 = vadd.f32 1.0, %v1446_v48 }
 0x3b7   :  { %1447 = vrcp.f32 %v380_v49 }
 0x3c4   :  { %v1448_v50 = vpop.eup %1447 }
 0x3c5   :  { %v396_v56 = vsub.f32 1.0, %v1448_v50  ;;  %v404_v60 = vmul.f32 %v1448_v50, %v402_v57 }
 0x417   :  { %v387_v51 = vpop.permute.xlu1 %386 }
 0x418   :  { %v389_v52 = vmul.f32 %v1448_v50, %v387_v51 }
 0x41a   :  { %391 = vrot.lane.b32.xlu0 %v389_v52, %s1627_s25 }
 0x48c   :  { %v392_v53 = vpop.permute.xlu0 %391 }
 0x48d   :  { %v394_v54 = vadd.f32 %v392_v53, %v1758_v24 }
 0x48f   :  { %1449 = vtanh.f32 %v394_v54 }
 0x49c   :  { %v1450_v55 = vpop.eup %1449 }
 0x49d   :  { %398 = vrot.lane.b32.xlu1 %v1450_v55, %s1628_s2 }
 0x50f   :  { %v399_v58 = vpop.permute.xlu1 %398 }
 0x510   :  { %v401_v59 = vmul.f32 %v399_v58, %v396_v56 }
 0x512   :  { %v1787_v61 = vadd.f32 %v404_v60, %v401_v59 }
 0x514   :  { %v407_v62 = vrot.slane %v1787_v61, 2  ;;  %v511_v23 = vrot.slane %v1787_v61, 6 }
 0x516   :  { %408 = vrot.lane.b32.xlu0 %v407_v62, %s1628_s2 }
 0x588   :  { %v409_v63 = vpop.permute.xlu0 %408 }
 0x589   :  { %1068 = vst.msk [vmem:[#allocation10 + $0x2] sm:$0x3] %vm1066_vm2, %v409_v63  ;;  %1357 = vmatmul.mubr.msk.f32.vlgmr.msra.gmra.mxu0 %vm194_vm3, %v409_v63 }
 0x58a   :  { %1371 = vmatpush3.msra.mxu0 %v1705_v2  ;;  %1378 = vmatprep.mubr.msk.f32.mxu0 %vm1626_vm0, %v1625_v0 }
 0x58b   :  { %1372 = vmatprep.subr.mxu0 %v1625_v0 }
 0x58c   :  { %1373 = vmatpush3.msra.mxu0 %v1708_v4 }
 0x58d   :  { %1374 = vmatprep.subr.mxu0 %v1625_v0 }
 0x58e   :  { %1375 = vmatpush3.msra.mxu0 %v1711_v6 }
 0x58f   :  { %1376 = vmatprep.subr.mxu0 %v1625_v0 }
 0x590   :  { %1377 = vmatpush3.msra.mxu0 %v1715_v8 }
 0x591   :  { %1392 = vmatprep.subr.mxu0 %v1625_v0 }
 0x649   :  { %v478_v1 = vpop.f32.mrf.mxu0 }
 0x64a   :  { %v492_v3 = vadd.f32 %v478_v1, %v1749_v16  ;;  %v483_v9 = vrot.slane %v478_v1, 4 }
 0x64b   :  { %v1358_v5 = vpop.f32.mrf.mxu0 }
 0x64c   :  { %v494_v7 = vrot.slane %v492_v3, 4  ;;  %v485_v10 = vadd.f32 %v483_v9, %v1758_v24 }
 0x64e   :  { %495 = vrot.lane.b32.xlu1 %v494_v7, %s1627_s25  ;;  %v1239_v11 = vmul.f32 -1.442695, %v485_v10 }
 0x650   :  { %1451 = vpow2.f32 %v1239_v11 }
 0x65d   :  { %v1452_v12 = vpop.eup %1451 }
 0x65e   :  { %v489_v13 = vadd.f32 1.0, %v1452_v12 }
 0x660   :  { %1453 = vrcp.f32 %v489_v13 }
 0x66d   :  { %v1454_v14 = vpop.eup %1453 }
 0x66e   :  { %v505_v21 = vsub.f32 1.0, %v1454_v14  ;;  %v513_v26 = vmul.f32 %v1454_v14, %v511_v23 }
 0x6c0   :  { %v496_v15 = vpop.permute.xlu1 %495 }
 0x6c1   :  { %v498_v17 = vmul.f32 %v1454_v14, %v496_v15 }
 0x6c3   :  { %500 = vrot.lane.b32.xlu0 %v498_v17, %s1627_s25 }
 0x735   :  { %v501_v18 = vpop.permute.xlu0 %500 }
 0x736   :  { %v503_v19 = vadd.f32 %v501_v18, %v1758_v24 }
 0x738   :  { %1455 = vtanh.f32 %v503_v19 }
 0x745   :  { %v1456_v20 = vpop.eup %1455 }
 0x746   :  { %507 = vrot.lane.b32.xlu1 %v1456_v20, %s1628_s2 }
 0x7b8   :  { %v508_v25 = vpop.permute.xlu1 %507 }
 0x7b9   :  { %v510_v27 = vmul.f32 %v508_v25, %v505_v21 }
 0x7bb   :  { %v1810_v28 = vadd.f32 %v513_v26, %v510_v27 }
 0x7bd   :  { %v516_v29 = vrot.slane %v1810_v28, 4  ;;  %v620_v47 = vrot.slane %v1810_v28, 6 }
 0x7bf   :  { %517 = vrot.lane.b32.xlu0 %v516_v29, %s1628_s2 }
 0x831   :  { %v518_v30 = vpop.permute.xlu0 %517 }
 0x832   :  { %1069 = vst.msk [vmem:[#allocation10 + $0x4] sm:$0x3] %vm1066_vm2, %v518_v30  ;;  %1368 = vmatmul.mubr.msk.f32.vlgmr.msra.gmra.mxu1 %vm194_vm3, %v518_v30 }
 0x833   :  { %1382 = vmatpush3.msra.mxu1 %v1705_v2  ;;  %1389 = vmatprep.mubr.msk.f32.mxu1 %vm1626_vm0, %v1625_v0 }
 0x834   :  { %1383 = vmatprep.subr.mxu1 %v1625_v0 }
 0x835   :  { %1384 = vmatpush3.msra.mxu1 %v1708_v4 }
 0x836   :  { %1385 = vmatprep.subr.mxu1 %v1625_v0 }
 0x837   :  { %1386 = vmatpush3.msra.mxu1 %v1711_v6 }
 0x838   :  { %1387 = vmatprep.subr.mxu1 %v1625_v0 }
 0x839   :  { %1388 = vmatpush3.msra.mxu1 %v1715_v8 }
 0x83a   :  { %1403 = vmatprep.subr.mxu1 %v1625_v0 }
 0x8f2   :  { %v587_v31 = vpop.f32.mrf.mxu1 }
 0x8f3   :  { %v601_v32 = vadd.f32 %v587_v31, %v1749_v16  ;;  %v592_v35 = vrot.slane %v587_v31, 2 }
 0x8f4   :  { %v1369_v33 = vpop.f32.mrf.mxu1 }
 0x8f5   :  { %v603_v34 = vrot.slane %v601_v32, 2  ;;  %v594_v36 = vadd.f32 %v592_v35, %v1758_v24 }
 0x8f7   :  { %604 = vrot.lane.b32.xlu1 %v603_v34, %s1627_s25  ;;  %v1241_v37 = vmul.f32 -1.442695, %v594_v36 }
 0x8f9   :  { %1457 = vpow2.f32 %v1241_v37 }
 0x906   :  { %v1458_v38 = vpop.eup %1457 }
 0x907   :  { %v598_v40 = vadd.f32 1.0, %v1458_v38 }
 0x909   :  { %1459 = vrcp.f32 %v598_v40 }
 0x916   :  { %v1460_v41 = vpop.eup %1459 }
 0x917   :  { %v614_v48 = vsub.f32 1.0, %v1460_v41  ;;  %v622_v50 = vmul.f32 %v1460_v41, %v620_v47 }
 0x969   :  { %v605_v42 = vpop.permute.xlu1 %604 }
 0x96a   :  { %v607_v43 = vmul.f32 %v1460_v41, %v605_v42 }
 0x96c   :  { %609 = vrot.lane.b32.xlu0 %v607_v43, %s1627_s25 }
 0x9de   :  { %v610_v44 = vpop.permute.xlu0 %609 }
 0x9df   :  { %v612_v45 = vadd.f32 %v610_v44, %v1758_v24 }
 0x9e1   :  { %1461 = vtanh.f32 %v612_v45 }
 0x9ee   :  { %v1462_v46 = vpop.eup %1461 }
 0x9ef   :  { %616 = vrot.lane.b32.xlu1 %v1462_v46, %s1628_s2 }
 0xa61   :  { %v617_v49 = vpop.permute.xlu1 %616 }
 0xa62   :  { %v619_v51 = vmul.f32 %v617_v49, %v614_v48 }
 0xa64   :  { %v1835_v52 = vadd.f32 %v622_v50, %v619_v51 }
 0xa66   :  { %v625_v53 = vrot.slane %v1835_v52, 6 }
 0xa68   :  { %626 = vrot.lane.b32.xlu0 %v625_v53, %s1628_s2 }
 0xada   :  { %v627_v54 = vpop.permute.xlu0 %626 }
 0xadb   :  { %1070 = vst.msk [vmem:[#allocation10 + $0x6] sm:$0x3] %vm1066_vm2, %v627_v54  ;;  %1379 = vmatmul.mubr.msk.f32.vlgmr.msra.gmra.mxu0 %vm194_vm3, %v627_v54 }
 0xadc   :  { %1393 = vmatpush3.msra.mxu0 %v1705_v2  ;;  %1400 = vmatprep.mubr.msk.f32.mxu0 %vm1626_vm0, %v1625_v0 }
 0xadd   :  { %1394 = vmatprep.subr.mxu0 %v1625_v0 }
 0xade   :  { %1395 = vmatpush3.msra.mxu0 %v1708_v4 }
 0xadf   :  { %1396 = vmatprep.subr.mxu0 %v1625_v0 }
 0xae0   :  { %1397 = vmatpush3.msra.mxu0 %v1711_v6 }
 0xae1   :  { %1398 = vmatprep.subr.mxu0 %v1625_v0 }
 0xae2   :  { %1399 = vmatpush3.msra.mxu0 %v1715_v8 }
 0xae3   :  { %1414 = vmatprep.subr.mxu0 %v1625_v0 }
 0xb9b   :  { %v696_v24 = vpop.f32.mrf.mxu0 }
 0xb9c   :  { %v707_v55 = vadd.f32 %v696_v24, %v1749_v16  ;;  %v700_v57 = vadd.f32 %v696_v24, %v1756_v22 }
 0xb9d   :  { %v1380_v56 = vpop.f32.mrf.mxu0 }
 0xb9e   :  { %709 = vrot.lane.b32.xlu1 %v707_v55, %s1627_s25  ;;  %v1243_v58 = vmul.f32 -1.442695, %v700_v57 }
 0xba0   :  { %1463 = vpow2.f32 %v1243_v58 }
 0xbad   :  { %v1464_v59 = vpop.eup %1463 }
 0xbae   :  { %v704_v60 = vadd.f32 1.0, %v1464_v59 }
 0xbb0   :  { %1465 = vrcp.f32 %v704_v60 }
 0xbbd   :  { %v1466_v62 = vpop.eup %1465 }
 0xbbe   :  { %v719_v9 = vsub.f32 1.0, %v1466_v62  ;;  %v726_v11 = vmul.f32 %v1466_v62, %v625_v53 }
 0xc10   :  { %v710_v63 = vpop.permute.xlu1 %709 }
 0xc11   :  { %v712_v1 = vmul.f32 %v1466_v62, %v710_v63 }
 0xc13   :  { %714 = vrot.lane.b32.xlu0 %v712_v1, %s1627_s25 }
 0xc85   :  { %v715_v3 = vpop.permute.xlu0 %714 }
 0xc86   :  { %v717_v5 = vadd.f32 %v715_v3, %v1756_v22 }
 0xc88   :  { %1467 = vtanh.f32 %v717_v5 }
 0xc95   :  { %v1468_v7 = vpop.eup %1467 }
 0xc96   :  { %721 = vrot.lane.b32.xlu1 %v1468_v7, %s1628_s2 }
 0xd08   :  { %v722_v10 = vpop.permute.xlu1 %721 }
 0xd09   :  { %v724_v12 = vmul.f32 %v722_v10, %v719_v9 }
 0xd0b   :  { %v1857_v13 = vadd.f32 %v726_v11, %v724_v12 }
 0xd0d   :  { %729 = vrot.lane.b32.xlu0 %v1857_v13, %s1628_s2  ;;  %v832_v31 = vrot.slane %v1857_v13, 6 }
 0xd7f   :  { %v730_v14 = vpop.permute.xlu0 %729 }
 0xd80   :  { %1071 = vst.msk [vmem:[#allocation10 + $0x8] sm:$0x3] %vm1066_vm2, %v730_v14  ;;  %1390 = vmatmul.mubr.msk.f32.vlgmr.msra.gmra.mxu1 %vm194_vm3, %v730_v14 }
 0xd81   :  { %1404 = vmatpush3.msra.mxu1 %v1705_v2  ;;  %1411 = vmatprep.mubr.msk.f32.mxu1 %vm1626_vm0, %v1625_v0 }
 0xd82   :  { %1405 = vmatprep.subr.mxu1 %v1625_v0 }
 0xd83   :  { %1406 = vmatpush3.msra.mxu1 %v1708_v4 }
 0xd84   :  { %1407 = vmatprep.subr.mxu1 %v1625_v0 }
 0xd85   :  { %1408 = vmatpush3.msra.mxu1 %v1711_v6 }
 0xd86   :  { %1409 = vmatprep.subr.mxu1 %v1625_v0 }
 0xd87   :  { %1410 = vmatpush3.msra.mxu1 %v1715_v8 }
 0xe40   :  { %v799_v15 = vpop.f32.mrf.mxu1 }
 0xe41   :  { %v813_v17 = vadd.f32 %v799_v15, %v1749_v16  ;;  %v804_v19 = vrot.slane %v799_v15, 6 }
 0xe42   :  { %v1391_v18 = vpop.f32.mrf.mxu1 }
 0xe43   :  { %v815_v2 = vrot.slane %v813_v17, 6  ;;  %v806_v20 = vadd.f32 %v804_v19, %v1756_v22 }
 0xe45   :  { %816 = vrot.lane.b32.xlu1 %v815_v2, %s1627_s25  ;;  %v1245_v21 = vmul.f32 -1.442695, %v806_v20  ;;  %v1115_v20 = vld [vmem:[#allocation8 + $0x18] sm:$0xff] }
 0xe47   :  { %1469 = vpow2.f32 %v1245_v21  ;;  %v1114_v21 = vld [vmem:[#allocation8 + $0x10] sm:$0xff] }
 0xe54   :  { %v1470_v4 = vpop.eup %1469 }
 0xe55   :  { %v810_v23 = vadd.f32 1.0, %v1470_v4  ;;  %v1113_v4 = vld [vmem:[#allocation8 + $0x8] sm:$0xff] }
 0xe57   :  { %1471 = vrcp.f32 %v810_v23  ;;  %v1112_v23 = vld [vmem:[#allocation8] sm:$0xff] }
 0xe64   :  { %v1472_v6 = vpop.eup %1471 }
 0xe65   :  { %v826_v30 = vsub.f32 1.0, %v1472_v6  ;;  %v834_v34 = vmul.f32 %v1472_v6, %v832_v31  ;;  %v1077_v31 = vrot.slane %v1787_v61, 4 }
 0xeb7   :  { %v817_v25 = vpop.permute.xlu1 %816 }
 0xeb8   :  { %v819_v26 = vmul.f32 %v1472_v6, %v817_v25 }
 0xeba   :  { %821 = vrot.lane.b32.xlu0 %v819_v26, %s1627_s25 }
 0xf2c   :  { %v822_v8 = vpop.permute.xlu0 %821 }
 0xf2d   :  { %v824_v27 = vadd.f32 %v822_v8, %v1756_v22 }
 0xf2f   :  { %1473 = vtanh.f32 %v824_v27 }
 0xf3c   :  { %v1474_v29 = vpop.eup %1473 }
 0xf3d   :  { %828 = vrot.lane.b32.xlu1 %v1474_v29, %s1628_s2 }
 0xfaf   :  { %v829_v32 = vpop.permute.xlu1 %828 }
 0xfb0   :  { %v831_v33 = vmul.f32 %v829_v32, %v826_v30  ;;  %v1078_v32 = vrot.slane %v1764_v39, 2 }
 0xfb2   :  { %v1879_v35 = vadd.f32 %v834_v34, %v831_v33 }
 0xfb4   :  { %v837_v36 = vrot.slane %v1879_v35, 2  ;;  %v941_v56 = vrot.slane %v1879_v35, 6  ;;  %v1075_v30 = vrot.slane %v1879_v35, 4 }
 0xfb6   :  { %838 = vrot.lane.b32.xlu0 %v837_v36, %s1628_s2 }
0x1028   :  { %v839_v37 = vpop.permute.xlu0 %838 }
0x1029   :  { %1072 = vst.msk [vmem:[#allocation10 + $0xa] sm:$0x3] %vm1066_vm2, %v839_v37  ;;  %1401 = vmatmul.mubr.msk.f32.vlgmr.msra.gmra.mxu0 %vm194_vm3, %v839_v37 }
0x102a   :  { %1422 = vmatprep.mubr.msk.f32.mxu0 %vm1626_vm0, %v1625_v0  ;;  %1415 = vmatpush3.msra.mxu0 %v1115_v20 }
0x102b   :  { %1416 = vmatprep.subr.mxu0 %v1625_v0 }
0x102c   :  { %1417 = vmatpush3.msra.mxu0 %v1114_v21 }
0x102d   :  { %1418 = vmatprep.subr.mxu0 %v1625_v0 }
0x102e   :  { %1419 = vmatpush3.msra.mxu0 %v1113_v4 }
0x102f   :  { %1420 = vmatprep.subr.mxu0 %v1625_v0  ;;  %v1076_v0 = vrot.slane %v1857_v13, 2 }
0x1030   :  { %1421 = vmatpush3.msra.mxu0 %v1112_v23 }
0x10e9   :  { %v908_v38 = vpop.f32.mrf.mxu0 }
0x10ea   :  { %v922_v40 = vadd.f32 %v908_v38, %v1749_v16  ;;  %v913_v43 = vrot.slane %v908_v38, 4 }
0x10eb   :  { %v1402_v41 = vpop.f32.mrf.mxu0 }
0x10ec   :  { %v924_v42 = vrot.slane %v922_v40, 4  ;;  %v915_v44 = vadd.f32 %v913_v43, %v1756_v22 }
0x10ee   :  { %925 = vrot.lane.b32.xlu1 %v924_v42, %s1627_s25  ;;  %v1247_v45 = vmul.f32 -1.442695, %v915_v44 }
0x10f0   :  { %1475 = vpow2.f32 %v1247_v45 }
0x10fd   :  { %v1476_v46 = vpop.eup %1475 }
0x10fe   :  { %v919_v48 = vadd.f32 1.0, %v1476_v46 }
0x1100   :  { %1477 = vrcp.f32 %v919_v48 }
0x110d   :  { %v1478_v49 = vpop.eup %1477 }
0x110e   :  { %v935_v55 = vsub.f32 1.0, %v1478_v49  ;;  %v943_v58 = vmul.f32 %v1478_v49, %v941_v56 }
0x1160   :  { %v926_v50 = vpop.permute.xlu1 %925 }
0x1161   :  { %v928_v51 = vmul.f32 %v1478_v49, %v926_v50 }
0x1163   :  { %930 = vrot.lane.b32.xlu0 %v928_v51, %s1627_s25 }
0x11d5   :  { %v931_v53 = vpop.permute.xlu0 %930 }
0x11d6   :  { %v933_v54 = vadd.f32 %v931_v53, %v1756_v22 }
0x11d8   :  { %1479 = vtanh.f32 %v933_v54 }
0x11e5   :  { %v1480_v24 = vpop.eup %1479 }
0x11e6   :  { %937 = vrot.lane.b32.xlu1 %v1480_v24, %s1628_s2 }
0x1258   :  { %v938_v57 = vpop.permute.xlu1 %937 }
0x1259   :  { %v940_v59 = vmul.f32 %v938_v57, %v935_v55 }
0x125b   :  { %v944_v60 = vadd.f32 %v943_v58, %v940_v59 }
0x125d   :  { %v946_v62 = vrot.slane %v944_v60, 4  ;;  %v1050_v6 = vrot.slane %v944_v60, 6 }
0x125f   :  { %947 = vrot.lane.b32.xlu0 %v946_v62, %s1628_s2 }
0x12d1   :  { %v948_v63 = vpop.permute.xlu0 %947 }
0x12d2   :  { %1073 = vst.msk [vmem:[#allocation10 + $0xc] sm:$0x3] %vm1066_vm2, %v948_v63  ;;  %1412 = vmatmul.mubr.msk.f32.vlgmr.msra.gmra.mxu1 %vm194_vm3, %v948_v63 }
0x1392   :  { %v1017_v1 = vpop.f32.mrf.mxu1 }
0x1393   :  { %v1031_v3 = vadd.f32 %v1017_v1, %v1749_v16  ;;  %v1022_v9 = vrot.slane %v1017_v1, 2 }
0x1394   :  { %v1413_v5 = vpop.f32.mrf.mxu1 }
0x1395   :  { %v1033_v7 = vrot.slane %v1031_v3, 2  ;;  %v1024_v10 = vadd.f32 %v1022_v9, %v1756_v22 }
0x1397   :  { %1034 = vrot.lane.b32.xlu1 %v1033_v7, %s1627_s25  ;;  %v1249_v11 = vmul.f32 -1.442695, %v1024_v10 }
0x1399   :  { %1481 = vpow2.f32 %v1249_v11 }
0x13a6   :  { %v1482_v12 = vpop.eup %1481 }
0x13a7   :  { %v1028_v14 = vadd.f32 1.0, %v1482_v12 }
0x13a9   :  { %1483 = vrcp.f32 %v1028_v14 }
0x13b6   :  { %v1484_v15 = vpop.eup %1483 }
0x13b7   :  { %v1052_v26 = vmul.f32 %v1484_v15, %v1050_v6 }
0x1409   :  { %v1035_v17 = vpop.permute.xlu1 %1034 }
0x140a   :  { %v1037_v18 = vmul.f32 %v1484_v15, %v1035_v17 }
0x140c   :  { %1039 = vrot.lane.b32.xlu0 %v1037_v18, %s1627_s25 }
0x147e   :  { %v1040_v2 = vpop.permute.xlu0 %1039 }
0x147f   :  { %v1042_v16 = vadd.f32 %v1040_v2, %v1756_v22  ;;  %v1044_v22 = vsub.f32 1.0, %v1484_v15 }
0x1481   :  { %1485 = vtanh.f32 %v1042_v16 }
0x148e   :  { %v1486_v19 = vpop.eup %1485 }
0x148f   :  { %1046 = vrot.lane.b32.xlu1 %v1486_v19, %s1628_s2 }
0x1501   :  { %v1047_v25 = vpop.permute.xlu1 %1046 }
0x1502   :  { %v1049_v8 = vmul.f32 %v1047_v25, %v1044_v22 }
0x1504   :  { %v1053_v27 = vadd.f32 %v1052_v26, %v1049_v8 }
0x1506   :  { %1079 = vrot.lane.b32.xlu1 %v1053_v27, %s1628_s2  ;;  %v1055_v29 = vrot.slane %v1053_v27, 6 }
0x1508   :  { %1056 = vrot.lane.b32.xlu0 %v1055_v29, %s1628_s2 }
0x150a   :  { %1083 = vrot.lane.b32.xlu1 %v1075_v30, %s1628_s2 }
0x150c   :  { %1081 = vrot.lane.b32.xlu0 %v1050_v6, %s1628_s2 }
0x150e   :  { %1087 = vrot.lane.b32.xlu1 %v1835_v52, %s1628_s2 }
0x1510   :  { %1085 = vrot.lane.b32.xlu0 %v1076_v0, %s1628_s2 }
0x1512   :  { %1091 = vrot.lane.b32.xlu1 %v1077_v31, %s1628_s2 }
0x1514   :  { %1089 = vrot.lane.b32.xlu0 %v620_v47, %s1628_s2 }
0x1518   :  { %1093 = vrot.lane.b32.xlu0 %v1078_v32, %s1628_s2 }
0x1578   :  { %v1080_v33 = vpop.permute.xlu1 %1079 }
0x1579   :  { %1104 = vst.msk [vmem:[#allocation10 - $0x6] sm:$0xc0] %vm1103_vm4, %v1080_v33 }
0x157a   :  { %v1057_v52 = vpop.permute.xlu0 %1056 }
0x157b   :  { %1074 = vst.msk [vmem:[#allocation10 + $0xe] sm:$0x3] %vm1066_vm2, %v1057_v52  ;;  %1423 = vmatmul.mubr.msk.f32.vlgmr.msra.gmra.mxu0 %vm194_vm3, %v1057_v52 }
0x157c   :  { %v1084_v61 = vpop.permute.xlu1 %1083 }
0x157d   :  { %1106 = vst.msk [vmem:[#allocation10 - $0x2] sm:$0xc0] %vm1103_vm4, %v1084_v61 }
0x157e   :  { %v1082_v13 = vpop.permute.xlu0 %1081 }
0x157f   :  { %1105 = vst.msk [vmem:[#allocation10 - $0x4] sm:$0xc0] %vm1103_vm4, %v1082_v13 }
0x1580   :  { %v1088_v28 = vpop.permute.xlu1 %1087 }
0x1581   :  { %1108 = vst.msk [vmem:[#allocation10 + $0x2] sm:$0xc0] %vm1103_vm4, %v1088_v28 }
0x1582   :  { %v1086_v39 = vpop.permute.xlu0 %1085 }
0x1583   :  { %1107 = vst.msk [vmem:[#allocation10] sm:$0xc0] %vm1103_vm4, %v1086_v39 }
0x1584   :  { %v1092_v47 = vpop.permute.xlu1 %1091 }
0x1585   :  { %1110 = vst.msk [vmem:[#allocation10 + $0x6] sm:$0xc0] %vm1103_vm4, %v1092_v47 }
0x1586   :  { %v1090_v34 = vpop.permute.xlu0 %1089 }
0x1587   :  { %1109 = vst.msk [vmem:[#allocation10 + $0x4] sm:$0xc0] %vm1103_vm4, %v1090_v34 }
0x158a   :  { %v1094_v35 = vpop.permute.xlu0 %1093 }
0x158b   :  { %1111 = vst.msk [vmem:[#allocation10 + $0x8] sm:$0xc0] %vm1103_vm4, %v1094_v35 }
0x158c   :  { %1580 = shalt.err (!%p1577_p10)
}
0x158d   :  { %s1630_s30 = smov 32   ;;  %s1631_s9 = smov 2   ;;  %v1250_v36 = vld [vmem:[%s1947_s6] ss:$0 sm:$0xff]  ;;  %vm1196_vm5 = vcmask 254976  }
0x158e   :  { %1209 = dma.vmem_to_hbm [thread:$0]  %s1204_s28, 256, %s1948_s7, [#allocation4], %s1630_s30, %s1630_s30, %s1631_s9  }
0x158f   :  { %s1632_s14 = smov [#allocation11]  }
0x1590   :  { %s1216_s15 = sshll.u32 %s1632_s14, 4  ;;  %s1217_s15 = int_to_ptr.vmem [resolvable:$true] %s1216_s15 }
0x1591   :  { %s1589_s16 = scalar_lea.vmem %s1217_s15, 32  ;;  %p1594_p12 = scmp.lt.s32.totalorder %s1217_s15, %s1217_s15 }
0x1592   :  { %p1590_p11 = scmp.ne.s32.totalorder %s1217_s15, %s1589_s16  ;;  %p1595_p13 = scmp.lt.s32.totalorder %s1589_s16, %s1589_s16 }
0x1594   :  { %p1596_p0 = por %p1595_p13, %p1594_p12 }
0x1596   :  { %p1597_p1 = pnand %p1596_p0, %p1590_p11 }
0x163b   :  { %v1191_v37 = vpop.f32.mrf.mxu0 }
0x163c   :  { %v1192_v38 = vadd.f32 %v1250_v36, %v1191_v37 }
0x163d   :  { %v1424_v40 = vpop.f32.mrf.mxu0 }
0x163e   :  { %1487 = vtanh.f32 %v1192_v38 }
0x164b   :  { %v1488_v41 = vpop.eup %1487 }
0x164c   :  { %1197 = vst.msk [vmem:[#allocation11] sm:$0x3] %vm1196_vm5, %v1488_v41 }
0x164d   :  { %1600 = shalt.err (!%p1597_p1)
}
0x164e   :  { %1219 = dma.vmem_to_hbm [thread:$0]  %s1217_s15, 32, %s1949_s8, [#allocation12]  }
0x164f   :  { %1615 = dma.done.wait [#allocation4], 256  }
0x1650   :  { %1616 = vsyncadd [#allocation4], 4294967040 }
0x1651   :  { %1617 = dma.done.wait [#allocation12], 32  }
0x1652   :  { %1618 = vsyncadd [#allocation12], 4294967264 }
0x1653   :  { %1226 = vsyncpa [#allocation3], 1 }
0x1654   :  { %1227 = vsyncpa [#allocation6], 1 }
0x1655   :  { %1228 = vsyncpa [#allocation9], 1 }
0x1656   :  { %1229 = vsyncpa [#allocation4], 1 }
0x1657   :  { %1230 = vsyncpa [#allocation12], 1 }

</bundles_post_ra>
